<compile_context>
chip_gen: v6e
topology: v6e:2x2x1
jax: 0.10.0
libtpu: 0.0.40
codegen_flags: <defaults>
</compile_context>

<pallas_src>
import functools

import jax
import jax.numpy as jnp
from jax.experimental import pallas as pl
from jax.experimental.pallas import tpu as pltpu


def _round_up(x, m):
    return ((x + m - 1) // m) * m


# -----------------------------------------------------------------------------
# Fused decode kernel: per-proposal box decoding, masking, scaling, row build.
# Proposals live on the lane axis; all math is on (1, TN) / (7, TN) tiles.
# -----------------------------------------------------------------------------
def _decode_kernel(feat_ref, out_ref, *, min_x, max_x, min_y, max_y):
    f = feat_ref[0]                        # (10, TN) f32, proposals on lanes

    scores = f[0:1, :]
    xs     = f[1:2, :]
    ys     = f[2:3, :]
    tl_rx  = f[3:4, :]
    tl_ry  = f[4:5, :]
    br_rx  = f[5:6, :]
    br_ry  = f[6:7, :]
    w_sc   = f[7:8, :]
    h_sc   = f[8:9, :]
    layer  = f[9:10, :]

    rx = jnp.float32(max_x - min_x)
    ry = jnp.float32(max_y - min_y)
    cx = jnp.float32((max_x + min_x) / 2.0)
    cy = jnp.float32((max_y + min_y) / 2.0)

    tl_x = xs - (rx * tl_rx + cx)
    tl_y = ys - (ry * tl_ry + cy)
    br_x = xs + (rx * br_rx + cx)
    br_y = ys + (ry * br_ry + cy)

    invalid = jnp.logical_or(br_x < tl_x, br_y < tl_y)
    sc = jnp.where(invalid, jnp.float32(-1.0), scores)

    out_ref[0] = jnp.concatenate(
        [sc,
         tl_x * w_sc, tl_y * h_sc,
         br_x * w_sc, br_y * h_sc,
         jnp.zeros_like(sc), layer], axis=0)          # (7, TN), lane-dense


def decode_detections(feats, base_layer_range, *, max_tile=8192):
    """feats: (B, 10, N) f32  ->  (B, 7, N) f32 detections (lane-dense)."""
    B, R, N = feats.shape
    min_y, max_y, min_x, max_x = [v / 8.0 / 2.0 for v in base_layer_range]

    # Lane-aligned tile; pad N so every block is a full multiple of 128 lanes.
    tn = min(max_tile, _round_up(N, 128))
    n_pad = _round_up(N, tn)
    if n_pad != N:
        feats = jnp.pad(feats, ((0, 0), (0, 0), (0, n_pad - N)))

    kern = functools.partial(_decode_kernel, min_x=min_x, max_x=max_x,
                             min_y=min_y, max_y=max_y)

    out = pl.pallas_call(
        kern,
        out_shape=jax.ShapeDtypeStruct((B, 7, n_pad), jnp.float32),
        grid=(B, n_pad // tn),
        in_specs=[pl.BlockSpec((1, R, tn), lambda b, n: (b, 0, n))],
        out_specs=pl.BlockSpec((1, 7, tn), lambda b, n: (b, 0, n)),
        compiler_params=pltpu.CompilerParams(
            dimension_semantics=("parallel", "parallel")),
        cost_estimate=pl.CostEstimate(
            flops=20 * B * n_pad,
            transcendentals=0,
            bytes_accessed=(R + 7) * 4 * B * n_pad),
    )(feats)
    return out[:, :, :N]


# -----------------------------------------------------------------------------
# Full forward (glue + fused Pallas decode kernel).
# -----------------------------------------------------------------------------
def proposal_generator(anchors_heats, corners_tl_regrs, corners_br_regrs,
                       base_layer_range, top_k=5000, num_dets=10000):
    B, C, H0, W0 = anchors_heats[0].shape

    layer_feats = []
    for i, (heat, tlr, brr) in enumerate(
            zip(anchors_heats, corners_tl_regrs, corners_br_regrs)):
        _, _, H, W = heat.shape
        HW = H * W
        K = min(top_k, HW)
        h_scale = H0 / H
        w_scale = W0 / W

        # _topk: top-K over flattened (cat, H, W); indices mod (H*W).
        scores, inds = jax.lax.top_k(heat.reshape(B, C * HW), K)
        inds = (inds % HW).astype(jnp.int32)
        xs = (inds % W).astype(jnp.float32)
        ys = (inds // W).astype(jnp.float32)

        # _tranpose_and_gather_feat: keep regressions channels-first (no NCHW
        # -> NHWC transpose), fuse tl+br, gather once along the lane axis.
        regr = jnp.concatenate(
            [tlr.reshape(B, 2, HW), brr.reshape(B, 2, HW)], axis=1)  # (B,4,HW)
        g = jnp.take_along_axis(
            regr, jnp.broadcast_to(inds[:, None, :], (B, 4, K)), axis=2)

        const = lambda v: jnp.full((B, 1, K), v, jnp.float32)
        layer_feats.append(jnp.concatenate(
            [scores[:, None, :].astype(jnp.float32),
             xs[:, None, :], ys[:, None, :],
             g.astype(jnp.float32),
             const(w_scale), const(h_scale), const(float(i))],
            axis=1))                                                  # (B,10,K)

    feats = jnp.concatenate(layer_feats, axis=2)        # (B, 10, N_total)
    dets = decode_detections(feats, base_layer_range)   # (B, 7, N_total)

    N = dets.shape[2]
    M = min(num_dets, N)
    # Final torch.topk + _gather_feat (row gather) in the glue: O(M) gather of
    # 7-wide rows, lane-dense source layout.
    _, top_inds = jax.lax.top_k(dets[:, 0, :], M)
    out = jnp.take_along_axis(dets, top_inds[:, None, :], axis=2)   # (B, 7, M)
    return out.transpose(0, 2, 1)                                   # (B, M, 7)


# -----------------------------------------------------------------------------
# Pure-JAX reference of the same forward (for correctness checking).
# -----------------------------------------------------------------------------
def proposal_generator_ref(anchors_heats, corners_tl_regrs, corners_br_regrs,
                           base_layer_range, top_k=5000, num_dets=10000):
    B, C, H0, W0 = anchors_heats[0].shape
    min_y, max_y, min_x, max_x = [v / 8.0 / 2.0 for v in base_layer_range]
    layer_dets = []
    for i, (heat, tlr, brr) in enumerate(
            zip(anchors_heats, corners_tl_regrs, corners_br_regrs)):
        _, _, H, W = heat.shape
        h_scale, w_scale = H0 / H, W0 / W
        K = min(top_k, H * W)
        flat = heat.reshape(B, C * H * W)
        scores, inds = jax.lax.top_k(flat, K)
        inds = inds % (H * W)
        ys = (inds // W).astype(jnp.float32)[..., None]
        xs = (inds % W).astype(jnp.float32)[..., None]
        tl = jnp.take_along_axis(
            tlr.transpose(0, 2, 3, 1).reshape(B, H * W, 2), inds[..., None], axis=1)
        br = jnp.take_along_axis(
            brr.transpose(0, 2, 3, 1).reshape(B, H * W, 2), inds[..., None], axis=1)
        tl_x = xs - ((max_x - min_x) * tl[..., 0:1] + (max_x + min_x) / 2)
        tl_y = ys - ((max_y - min_y) * tl[..., 1:2] + (max_y + min_y) / 2)
        br_x = xs + ((max_x - min_x) * br[..., 0:1] + (max_x + min_x) / 2)
        br_y = ys + ((max_y - min_y) * br[..., 1:2] + (max_y + min_y) / 2)
        invalid = jnp.logical_or(br_x < tl_x, br_y < tl_y)
        sc = jnp.where(invalid, -1.0, scores[..., None])
        det = jnp.concatenate(
            [sc, tl_x * w_scale, tl_y * h_scale, br_x * w_scale, br_y * h_scale,
             jnp.zeros_like(sc), jnp.full_like(sc, float(i))], axis=2)
        layer_dets.append(det)
    dets = jnp.concatenate(layer_dets, axis=1)
    M = min(num_dets, dets.shape[1])
    _, top_inds = jax.lax.top_k(dets[:, :, 0], M)
    return jnp.take_along_axis(dets, top_inds[..., None], axis=1)


if __name__ == "__main__":
    key = jax.random.PRNGKey(0)
    B, C = 2, 4
    layer_shapes = [(16, 16), (8, 8)]               # two pyramid layers
    base_layer_range = [24.0, 48.0, 24.0, 48.0]     # [min_y, max_y, min_x, max_x]

    anchors_heats, corners_tl_regrs, corners_br_regrs = [], [], []
    for (H, W) in layer_shapes:
        key, k1, k2, k3 = jax.random.split(key, 4)
        anchors_heats.append(
            jax.nn.sigmoid(jax.random.normal(k1, (B, C, H, W), jnp.float32)))
        corners_tl_regrs.append(
            jax.random.normal(k2, (B, 2, H, W), jnp.float32) * 0.5)
        corners_br_regrs.append(
            jax.random.normal(k3, (B, 2, H, W), jnp.float32) * 0.5)

    out = proposal_generator(anchors_heats, corners_tl_regrs, corners_br_regrs,
                             base_layer_range)
    out = jax.block_until_ready(out)

    ref = proposal_generator_ref(anchors_heats, corners_tl_regrs,
                                 corners_br_regrs, base_layer_range)
    ref = jax.block_until_ready(ref)

    assert out.shape == ref.shape, (out.shape, ref.shape)
    assert jnp.allclose(out, ref, atol=1e-5), float(jnp.max(jnp.abs(out - ref)))

    print("KERNEL_OK")
</pallas_src>

<mosaic_0001>
module attributes {stable_mosaic.version = 11 : i64} {
  func.func @_decode_kernel(%arg0: i32, %arg1: i32, %arg2: memref<1x10x384xf32, #tpu.memory_space<vmem>>, %arg3: memref<1x7x384xf32, #tpu.memory_space<vmem>>) attributes {dimension_semantics = [#tpu.dimension_semantics<parallel>, #tpu.dimension_semantics<parallel>], iteration_bounds = array<i64: 2, 1>, scalar_prefetch = 0 : i64, scratch_operands = 0 : i64, tpu.core_type = #tpu.core_type<tc>, window_params = [{transform_indices = @transform_0, window_bounds = array<i64: 1, 10, 384>}, {transform_indices = @transform_1, window_bounds = array<i64: 1, 7, 384>}]} {
    %c0 = arith.constant 0 : index
    %c0_0 = arith.constant 0 : index
    %c0_1 = arith.constant 0 : index
    %0 = vector.load %arg2[%c0, %c0_0, %c0_1] : memref<1x10x384xf32, #tpu.memory_space<vmem>>, vector<1x10x384xf32>
    %1 = vector.shape_cast %0 : vector<1x10x384xf32> to vector<10x384xf32>
    %2 = vector.extract_strided_slice %1 {offsets = [0, 0], sizes = [1, 384], strides = [1, 1]} : vector<10x384xf32> to vector<1x384xf32>
    %3 = vector.extract_strided_slice %1 {offsets = [1, 0], sizes = [1, 384], strides = [1, 1]} : vector<10x384xf32> to vector<1x384xf32>
    %4 = vector.extract_strided_slice %1 {offsets = [2, 0], sizes = [1, 384], strides = [1, 1]} : vector<10x384xf32> to vector<1x384xf32>
    %5 = vector.extract_strided_slice %1 {offsets = [3, 0], sizes = [1, 384], strides = [1, 1]} : vector<10x384xf32> to vector<1x384xf32>
    %6 = vector.extract_strided_slice %1 {offsets = [4, 0], sizes = [1, 384], strides = [1, 1]} : vector<10x384xf32> to vector<1x384xf32>
    %7 = vector.extract_strided_slice %1 {offsets = [5, 0], sizes = [1, 384], strides = [1, 1]} : vector<10x384xf32> to vector<1x384xf32>
    %8 = vector.extract_strided_slice %1 {offsets = [6, 0], sizes = [1, 384], strides = [1, 1]} : vector<10x384xf32> to vector<1x384xf32>
    %9 = vector.extract_strided_slice %1 {offsets = [7, 0], sizes = [1, 384], strides = [1, 1]} : vector<10x384xf32> to vector<1x384xf32>
    %10 = vector.extract_strided_slice %1 {offsets = [8, 0], sizes = [1, 384], strides = [1, 1]} : vector<10x384xf32> to vector<1x384xf32>
    %11 = vector.extract_strided_slice %1 {offsets = [9, 0], sizes = [1, 384], strides = [1, 1]} : vector<10x384xf32> to vector<1x384xf32>
    %cst = arith.constant 1.500000e+00 : f32
    %12 = vector.broadcast %cst : f32 to vector<1x384xf32>
    %13 = arith.mulf %12, %5 : vector<1x384xf32>
    %cst_2 = arith.constant 2.250000e+00 : f32
    %14 = vector.broadcast %cst_2 : f32 to vector<1x384xf32>
    %15 = arith.addf %13, %14 : vector<1x384xf32>
    %16 = arith.subf %3, %15 : vector<1x384xf32>
    %cst_3 = arith.constant 1.500000e+00 : f32
    %17 = vector.broadcast %cst_3 : f32 to vector<1x384xf32>
    %18 = arith.mulf %17, %6 : vector<1x384xf32>
    %cst_4 = arith.constant 2.250000e+00 : f32
    %19 = vector.broadcast %cst_4 : f32 to vector<1x384xf32>
    %20 = arith.addf %18, %19 : vector<1x384xf32>
    %21 = arith.subf %4, %20 : vector<1x384xf32>
    %cst_5 = arith.constant 1.500000e+00 : f32
    %22 = vector.broadcast %cst_5 : f32 to vector<1x384xf32>
    %23 = arith.mulf %22, %7 : vector<1x384xf32>
    %cst_6 = arith.constant 2.250000e+00 : f32
    %24 = vector.broadcast %cst_6 : f32 to vector<1x384xf32>
    %25 = arith.addf %23, %24 : vector<1x384xf32>
    %26 = arith.addf %3, %25 : vector<1x384xf32>
    %cst_7 = arith.constant 1.500000e+00 : f32
    %27 = vector.broadcast %cst_7 : f32 to vector<1x384xf32>
    %28 = arith.mulf %27, %8 : vector<1x384xf32>
    %cst_8 = arith.constant 2.250000e+00 : f32
    %29 = vector.broadcast %cst_8 : f32 to vector<1x384xf32>
    %30 = arith.addf %28, %29 : vector<1x384xf32>
    %31 = arith.addf %4, %30 : vector<1x384xf32>
    %32 = arith.cmpf olt, %26, %16 : vector<1x384xf32>
    %33 = arith.cmpf olt, %31, %21 : vector<1x384xf32>
    %34 = arith.ori %32, %33 : vector<1x384xi1>
    %cst_9 = arith.constant -1.000000e+00 : f32
    %35 = vector.broadcast %cst_9 : f32 to vector<1x384xf32>
    %36 = arith.select %34, %35, %2 : vector<1x384xi1>, vector<1x384xf32>
    %37 = arith.mulf %16, %9 : vector<1x384xf32>
    %38 = arith.mulf %21, %10 : vector<1x384xf32>
    %39 = arith.mulf %26, %9 : vector<1x384xf32>
    %40 = arith.mulf %31, %10 : vector<1x384xf32>
    %cst_10 = arith.constant 0.000000e+00 : f32
    %41 = vector.broadcast %cst_10 : f32 to vector<1x384xf32>
    %42 = tpu.concatenate %36, %37, %38, %39, %40, %41, %11 in 0 : vector<1x384xf32>, vector<1x384xf32>, vector<1x384xf32>, vector<1x384xf32>, vector<1x384xf32>, vector<1x384xf32>, vector<1x384xf32> -> vector<7x384xf32>
    %c0_11 = arith.constant 0 : index
    %c0_12 = arith.constant 0 : index
    %c0_13 = arith.constant 0 : index
    %43 = vector.load %arg3[%c0_11, %c0_12, %c0_13] : memref<1x7x384xf32, #tpu.memory_space<vmem>>, vector<1x7x384xf32>
    %44 = vector.shape_cast %43 : vector<1x7x384xf32> to vector<7x384xf32>
    %45 = vector.shape_cast %42 : vector<7x384xf32> to vector<1x7x384xf32>
    tpu.vector_store %arg3[%c0_11, %c0_12, %c0_13], %45 {strides = array<i32>} : memref<1x7x384xf32, #tpu.memory_space<vmem>>, vector<1x7x384xf32>,
    return
  }
  func.func @transform_0(%arg0: i32, %arg1: i32) -> (i32, i32, i32) {
    %c0_i32 = arith.constant 0 : i32
    %c0_i32_0 = arith.constant 0 : i32
    return %arg0, %c0_i32, %arg1 : i32, i32, i32
  }
  func.func @transform_1(%arg0: i32, %arg1: i32) -> (i32, i32, i32) {
    %c0_i32 = arith.constant 0 : i32
    %c0_i32_0 = arith.constant 0 : i32
    return %arg0, %c0_i32, %arg1 : i32, i32, i32
  }
}

</mosaic_0001>

<bundles_post_ra>
// kernel: tpu_custom_call.1
= control target key start
LH: loop header
LB: loop body
LE: loop exit
PB: predicated region body
PF: predicated region fallthrough
CT: control target
= control target key end

     0   :  { %s461_s6 = smov 0   ;;  %s463_s7 = smov 0   ;;  %s541_s0 = inlined_call_operand.vmem [shape: f32[2,10,384], index: 0, kind: input, shape index: {}]   ;;  %s542_s1 = inlined_call_operand.vmem [shape: f32[2,7,384], index: 1, kind: output, shape index: {}]  }
   0x1   :  { %s465_s8 = smov 0  }
   0x2 LB: > { %s23_s9 = sadd.s32 1, %s444_s7  ;;  %p394_p0 = scmp.ge.s32.totalorder %s448_s8, 1  ;;  %s448_s8 = sphi %s465_s8, %s11_s8   ;;  %s444_s7 = sphi %s463_s7, %s544_s7   ;;  %s440_s6 = sphi %s461_s6, %s543_s6  }
   0x3   : > { %p25_p1 = scmp.ge.s32.totalorder %s23_s9, 2  ;;  %p108_p2 = scmp.lt.s32.totalorder %s448_s8, 3 }
   0x5   : > { %s546_s9 = smov (%p25_p1, %s23_s9), 0  ;;  %p109_p3 = pnand %p394_p0, %p108_p2 }
   0x6   : > { %p137_p4 = scmp.lt.s32.totalorder (!%p109_p3), %s440_s6, 1 }
   0x7   : > { %112 = sbr.rel (%p109_p3) target bundleno = 44 (0x2c), region = 24 }
   0xc   : > { %s548_s6 = smov (!%p137_p4, %s440_s6), 1  ;;  %vm276_vm0 = vcmask 1040384   ;;  %vm280_vm1 = vcmask 1041408   ;;  %vm284_vm3 = vcmask 1042432   ;;  %v450_v26 = vmov 0  }
   0xd   : > { %s399_s10 = smul.u32 48, %s548_s6  ;;  %vm288_vm4 = vcmask 1043456   ;;  %vm292_vm6 = vcmask 1044480   ;;  %vm296_vm7 = vcmask 1045504  }
   0xe   : > { %s400_s14 = smul.u32 24, %s548_s6 }
   0xf   : > { %s144_s13 = scalar_lea.vmem %s541_s0, %s399_s10 }
  0x10   : > { %v156_v0 = vld [vmem:[%s144_s13] sm:$0xff]  ;;  %v157_v1 = vld [vmem:[%s144_s13 + $0x8] sm:$0xff]  ;;  %v485_v2 = vld [vmem:[%s144_s13 + $0x10] sm:$0xff]  ;;  %s154_s17 = scalar_lea.vmem %s542_s1, %s400_s14 }
  0x11   : > { %v162_v3 = vmul.f32 1.5, %v156_v0  ;;  %v163_v4 = vmul.f32 1.5, %v157_v1  ;;  %v164_v7 = vmul.f32 1.5, %v485_v2  ;;  %v488_v8 = vld [vmem:[%s144_s13 + $0x18] sm:$0x3]  ;;  %v216_v13 = vrot.slane %v156_v0, 6 }
  0x12   : > { %v490_v17 = vld [vmem:[%s144_s13 + $0x20] sm:$0x3]  ;;  %v207_v20 = vrot.slane %v156_v0, 7  ;;  %v228_v21 = vrot.slane %v488_v8, 6  ;;  %v217_v22 = vrot.slane %v157_v1, 6  ;;  %v208_v28 = vrot.slane %v157_v1, 7 }
  0x13   : > { %v165_v5 = vadd.f32 2.25, %v162_v3  ;;  %v166_v6 = vadd.f32 2.25, %v163_v4  ;;  %v167_v14 = vadd.f32 2.25, %v164_v7  ;;  %v493_v23 = vld [vmem:[%s144_s13 + $0x28] sm:$0x3]  ;;  %v229_v29 = vrot.slane %v490_v17, 6 }
  0x14   : > { %v209_v33 = vrot.slane %v485_v2, 7  ;;  %v218_v36 = vrot.slane %v485_v2, 6  ;;  %v230_v37 = vrot.slane %v493_v23, 6  ;;  %v270_v55 = vrot.slane %v488_v8, 3 }
  0x15   : > { %v171_v9 = vrot.slane %v165_v5, 2  ;;  %v180_v10 = vrot.slane %v165_v5, 4  ;;  %v172_v11 = vrot.slane %v166_v6, 2  ;;  %v181_v12 = vrot.slane %v166_v6, 4 }
  0x16   : > { %v173_v24 = vrot.slane %v167_v14, 2  ;;  %v182_v25 = vrot.slane %v167_v14, 4  ;;  %v271_v63 = vrot.slane %v490_v17, 3 }
  0x17   : > { %v177_v15 = vsub.f32 %v156_v0, %v171_v9  ;;  %v186_v16 = vadd.f32 %v180_v10, %v156_v0  ;;  %v178_v18 = vsub.f32 %v157_v1, %v172_v11  ;;  %v187_v19 = vadd.f32 %v181_v12, %v157_v1 }
  0x18   : > { %v179_v39 = vsub.f32 %v485_v2, %v173_v24  ;;  %v188_v40 = vadd.f32 %v182_v25, %v485_v2 }
  0x19   : > { %vm189_vm2 = vcmp.lt.f32.partialorder %v186_v16, %v177_v15  ;;  %vm190_vm5 = vcmp.lt.f32.partialorder %v187_v19, %v178_v18  ;;  %v237_v31 = vmul.f32 %v216_v13, %v186_v16  ;;  %v240_v34 = vmul.f32 %v228_v21, %v186_v16 }
  0x1a   : > { %v192_v27 = vsel %vm189_vm2, 1, %v450_v26  ;;  %v193_v32 = vsel %vm190_vm5, 1, %v450_v26  ;;  %v238_v38 = vmul.f32 %v217_v22, %v187_v19  ;;  %v222_v41 = vmul.f32 %v216_v13, %v177_v15 }
  0x1b   : > { %v195_v30 = vrot.slane %v192_v27, 1  ;;  %v196_v35 = vrot.slane %v193_v32, 1  ;;  %v234_v42 = vmul.f32 %v228_v21, %v177_v15  ;;  %v241_v43 = vmul.f32 %v229_v29, %v187_v19 }
  0x1c   : > { %v255_v45 = vrot.slane %v237_v31, 6  ;;  %v223_v46 = vmul.f32 %v217_v22, %v178_v18  ;;  %vm191_vm12 = vcmp.lt.f32.partialorder %v188_v40, %v179_v39  ;;  %v235_v49 = vmul.f32 %v229_v29, %v178_v18 }
  0x1d   : > { %vm198_vm8 = vcmp.ne.s32.totalorder %v195_v30, 0  ;;  %vm199_vm10 = vcmp.ne.s32.totalorder %v196_v35, 0  ;;  %v194_v50 = vsel %vm191_vm12, 1, %v450_v26  ;;  %v264_v51 = vrot.slane %v240_v34, 6 }
  0x1e   : > { %vm201_vm9 = vmor %vm189_vm2, %vm198_vm8  ;;  %v256_v53 = vrot.slane %v238_v38, 6  ;;  %v197_v54 = vrot.slane %v194_v50, 1  ;;  %v265_v57 = vrot.slane %v241_v43, 6  ;;  %v239_v58 = vmul.f32 %v218_v36, %v188_v40 }
  0x1f   : > { %v213_v44 = vsel %vm201_vm9, -1.0, %v207_v20  ;;  %vm202_vm11 = vmor %vm190_vm5, %vm199_vm10  ;;  %v242_v61 = vmul.f32 %v230_v37, %v188_v40  ;;  %v224_v1 = vmul.f32 %v218_v36, %v179_v39  ;;  %v236_v5 = vmul.f32 %v230_v37, %v179_v39 }
  0x20   : > { %v246_v47 = vrot.slane %v213_v44, 1  ;;  %v214_v48 = vsel %vm202_vm11, -1.0, %v208_v28  ;;  %vm200_vm13 = vcmp.ne.s32.totalorder %v197_v54, 0  ;;  %v257_v9 = vrot.slane %v239_v58, 6 }
  0x21   : > { %v247_v52 = vrot.slane %v214_v48, 1  ;;  %vm203_vm14 = vmor %vm191_vm12, %vm200_vm13  ;;  %v266_v12 = vrot.slane %v242_v61, 6  ;;  %v272_v15 = vrot.slane %v493_v23, 3 }
  0x22   : > { %v277_v56 = vsel %vm276_vm0, %v246_v47, %v222_v41  ;;  %v215_v4 = vsel %vm203_vm14, -1.0, %v209_v33 }
  0x23   : > { %v281_v59 = vsel %vm280_vm1, %v277_v56, %v234_v42  ;;  %v278_v60 = vsel %vm276_vm0, %v247_v52, %v223_v46  ;;  %v248_v8 = vrot.slane %v215_v4, 1 }
  0x24   : > { %v285_v62 = vsel %vm284_vm3, %v281_v59, %v255_v45  ;;  %v282_v0 = vsel %vm280_vm1, %v278_v60, %v235_v49 }
  0x25   : > { %v289_v2 = vsel %vm288_vm4, %v285_v62, %v264_v51  ;;  %v286_v3 = vsel %vm284_vm3, %v282_v0, %v256_v53  ;;  %v279_v14 = vsel %vm276_vm0, %v248_v8, %v224_v1 }
  0x26   : > { %v293_v6 = vsel %vm292_vm6, %v289_v2, 0.0  ;;  %v290_v7 = vsel %vm288_vm4, %v286_v3, %v265_v57  ;;  %v283_v16 = vsel %vm280_vm1, %v279_v14, %v236_v5 }
  0x27   : > { %v297_v10 = vsel %vm296_vm7, %v293_v6, %v270_v55  ;;  %v294_v11 = vsel %vm292_vm6, %v290_v7, 0.0  ;;  %v287_v17 = vsel %vm284_vm3, %v283_v16, %v257_v9 }
  0x28   : > { %300 = vst [vmem:[%s154_s17] sm:$0x7f] %v297_v10  ;;  %v298_v13 = vsel %vm296_vm7, %v294_v11, %v271_v63  ;;  %v291_v18 = vsel %vm288_vm4, %v287_v17, %v266_v12 }
  0x29   : > { %301 = vst [vmem:[%s154_s17 + $0x8] sm:$0x7f] %v298_v13  ;;  %v295_v19 = vsel %vm292_vm6, %v291_v18, 0.0 }
  0x2a   : > { %v299_v20 = vsel %vm296_vm7, %v295_v19, %v272_v15 }
  0x2b   : > { %302 = vst [vmem:[%s154_s17 + $0x10] sm:$0x7f] %v299_v20 }
  0x2c PF: > { %s11_s8 = sadd.s32 1, %s448_s8   ;;  %s543_s6 = smov %s444_s7 }
  0x2d   : > { %p8_p5 = scmp.ge.s32.totalorder %s11_s8, 4   ;;  %s544_s7 = smov %s546_s9 }
  0x2f   :  { %10 = sbr.rel (!%p8_p5) target bundleno = 2 (0x2), region = 54 }

</bundles_post_ra>
